<compile_context>
chip_gen: v7x
topology: tpu7x:2x2x1
jax: 0.10.0
libtpu: 0.0.40
codegen_flags: <defaults>
</compile_context>

<pallas_src>
import jax
import jax.numpy as jnp
import numpy as np
from jax.experimental import pallas as pl
from jax.experimental.pallas import tpu as pltpu

# Fixed (non-trainable) Sobel weights — identical to Sobelxy.__init__ (used only
# by the pure-JAX reference below; the kernel uses the separable form).
_KX = ((-1.0, 0.0, 1.0), (-2.0, 0.0, 2.0), (-1.0, 0.0, 1.0))
_KY = ((1.0, 2.0, 1.0), (0.0, 0.0, 0.0), (-1.0, -2.0, -1.0))


def _make_taylor_kernel(num_gd):
    """Builds the kernel for a fixed number of gd inputs (each its own ref)."""

    def kernel(*refs):
        inp_ref, res_ref = refs[0], refs[1]
        gd_refs = refs[2:2 + num_gd]
        out_ref = refs[2 + num_gd]              # (1, TB, 3) per-batch partial sums

        x_in = inp_ref[...].astype(jnp.float32)   # (TB, H, W)
        x_res = res_ref[...].astype(jnp.float32)

        # Zero-boundary shifts along rows (axis 1, sublane) and cols (axis 2, lane).
        def sh_up(x):      # y[:, i, :] = x[:, i+1, :], zeros at i == H-1
            return jnp.concatenate([x[:, 1:, :], jnp.zeros_like(x[:, :1, :])], axis=1)

        def sh_down(x):    # y[:, i, :] = x[:, i-1, :], zeros at i == 0
            return jnp.concatenate([jnp.zeros_like(x[:, :1, :]), x[:, :-1, :]], axis=1)

        def sh_left(x):    # y[:, :, j] = x[:, :, j+1], zeros at j == W-1
            return jnp.concatenate([x[:, :, 1:], jnp.zeros_like(x[:, :, :1])], axis=2)

        def sh_right(x):   # y[:, :, j] = x[:, :, j-1], zeros at j == 0
            return jnp.concatenate([jnp.zeros_like(x[:, :, :1]), x[:, :, :-1]], axis=2)

        def sobel(x):
            # Separable Sobel == F.conv2d(x, kx/ky, padding=1) (cross-correlation,
            # zero pad):  kx = [1,2,1]^T x [-1,0,1],  ky = [1,0,-1]^T x [1,2,1].
            v = sh_down(x) + 2.0 * x + sh_up(x)       # vertical smooth [1,2,1]
            sx = sh_left(v) - sh_right(v)             # horizontal diff [-1,0,1]
            h = sh_right(x) + 2.0 * x + sh_left(x)    # horizontal smooth [1,2,1]
            sy = sh_down(h) - sh_up(h)                # vertical diff [1,0,-1]
            return jnp.abs(sx) + jnp.abs(sy)

        g_in = sobel(x_in)
        g_res = sobel(x_res)

        # demo = running elementwise max of the gd tensors, clamped at 0
        # (the PyTorch loop starts from torch.zeros).
        demo = jnp.zeros_like(x_in)
        for g_ref in gd_refs:
            demo = jnp.maximum(demo, g_ref[...].astype(jnp.float32))

        def psum(x):  # (TB, H, W) -> (TB, 1): per-batch-element sum
            return jnp.sum(x, axis=2).sum(axis=1, keepdims=True)

        out_ref[0] = jnp.concatenate(
            [psum(jnp.abs(x_in - x_res)),     # L1 intensity partial
             psum(jnp.abs(g_in - g_res)),     # gradient-vs-result partial
             psum(jnp.abs(g_in - demo))],     # gradient-vs-demo partial
            axis=1)                            # (TB, 3)

    return kernel


def taylor_loss_pallas(inp, res, gd_list, *, block_budget_bytes=8 * 1024 * 1024):
    """inp, res: (B, 1, H, W); gd_list: list of (B, 1, H, W).

    Returns (loss_L1, loss_g, loss_L1 + loss_g), exactly like Taylor_loss.forward.
    """
    B, C, H, W = res.shape
    assert C == 1, "Sobelxy uses a (1,1,3,3) weight => single-channel inputs"

    x_in = inp[:, 0]                 # keep caller dtype; up-cast inside kernel
    x_res = res[:, 0]
    gds = [g[:, 0] for g in gd_list]
    G = len(gds)

    # Largest batch-tile TB (divisor of B) whose double-buffered input blocks
    # fit the VMEM budget: amortizes per-step overhead for small images while
    # staying inside VMEM for large ones (falls back to TB == 1).
    per_elem = (2 + G) * H * W * 4 * 2      # f32 worst case, double-buffered
    TB = 1
    for d in range(1, B + 1):
        if B % d == 0 and d * per_elem <= block_budget_bytes:
            TB = d
    nsteps = B // TB

    in_spec = pl.BlockSpec((TB, H, W), lambda s: (s, 0, 0))
    partials = pl.pallas_call(
        _make_taylor_kernel(G),
        out_shape=jax.ShapeDtypeStruct((nsteps, TB, 3), jnp.float32),
        grid_spec=pltpu.PrefetchScalarGridSpec(
            num_scalar_prefetch=0,
            grid=(nsteps,),
            in_specs=[in_spec] * (2 + G),
            out_specs=pl.BlockSpec((1, TB, 3), lambda s: (s, 0, 0)),
        ),
        compiler_params=pltpu.CompilerParams(
            dimension_semantics=("parallel",),        # megacore sharding on v7x
            vmem_limit_bytes=48 * 1024 * 1024),        # above 16/32 MiB defaults
    )(x_in, x_res, *gds)

    # Final reduction over per-batch partials (done once, in f32, by XLA).
    totals = jnp.sum(partials.reshape(B, 3), axis=0)
    n = jnp.float32(B * H * W)       # F.l1_loss default reduction='mean', C == 1
    loss_L1 = totals[0] / n
    loss_g = totals[1] / n + totals[2] / n
    return loss_L1, loss_g, loss_L1 + loss_g


# ---------------- pure-JAX reference for a correctness check ----------------
def _sobel_ref(x):  # x: (B, H, W)
    H, W = x.shape[1], x.shape[2]
    xp = jnp.pad(x, ((0, 0), (1, 1), (1, 1)))
    sx = sum(_KX[i][j] * xp[:, i:i + H, j:j + W]
             for i in range(3) for j in range(3) if _KX[i][j] != 0.0)
    sy = sum(_KY[i][j] * xp[:, i:i + H, j:j + W]
             for i in range(3) for j in range(3) if _KY[i][j] != 0.0)
    return jnp.abs(sx) + jnp.abs(sy)


def _taylor_loss_ref(inp, res, gd_list):
    x_in = inp[:, 0].astype(jnp.float32)
    x_res = res[:, 0].astype(jnp.float32)
    loss_L1 = jnp.mean(jnp.abs(inp.astype(jnp.float32) - res.astype(jnp.float32)))
    g_in = _sobel_ref(x_in)
    g_res = _sobel_ref(x_res)
    loss_g1 = jnp.mean(jnp.abs(g_in - g_res))
    demo = jnp.zeros_like(x_in)
    for g in gd_list:
        demo = jnp.maximum(demo, g[:, 0].astype(jnp.float32))
    loss_g2 = jnp.mean(jnp.abs(g_in - demo))
    loss_g = loss_g1 + loss_g2
    return loss_L1, loss_g, loss_L1 + loss_g


if __name__ == "__main__":
    key = jax.random.PRNGKey(0)
    B, C, H, W = 2, 1, 16, 16
    G = 3  # len(gd)

    k1, k2, k3 = jax.random.split(key, 3)
    inp = jax.random.uniform(k1, (B, C, H, W), jnp.float32)
    res = jax.random.uniform(k2, (B, C, H, W), jnp.float32)
    gd = [jax.random.normal(jax.random.fold_in(k3, i), (B, C, H, W), jnp.float32)
          for i in range(G)]

    out = taylor_loss_pallas(inp, res, gd)
    out = jax.block_until_ready(out)

    ref = _taylor_loss_ref(inp, res, gd)
    for o, r in zip(out, ref):
        np.testing.assert_allclose(np.asarray(o), np.asarray(r),
                                   rtol=1e-5, atol=1e-5)

    print("KERNEL_OK")
</pallas_src>

<mosaic_0001>
module attributes {stable_mosaic.version = 11 : i64} {
  func.func @kernel(%arg0: i32, %arg1: memref<2x16x16xf32, #tpu.memory_space<vmem>>, %arg2: memref<2x16x16xf32, #tpu.memory_space<vmem>>, %arg3: memref<2x16x16xf32, #tpu.memory_space<vmem>>, %arg4: memref<2x16x16xf32, #tpu.memory_space<vmem>>, %arg5: memref<2x16x16xf32, #tpu.memory_space<vmem>>, %arg6: memref<1x2x3xf32, #tpu.memory_space<vmem>>) attributes {dimension_semantics = [#tpu.dimension_semantics<parallel>], iteration_bounds = array<i64: 1>, scalar_prefetch = 0 : i64, scratch_operands = 0 : i64, tpu.core_type = #tpu.core_type<tc>, window_params = [{transform_indices = @transform_0, window_bounds = array<i64: 2, 16, 16>}, {transform_indices = @transform_1, window_bounds = array<i64: 2, 16, 16>}, {transform_indices = @transform_2, window_bounds = array<i64: 2, 16, 16>}, {transform_indices = @transform_3, window_bounds = array<i64: 2, 16, 16>}, {transform_indices = @transform_4, window_bounds = array<i64: 2, 16, 16>}, {transform_indices = @transform_5, window_bounds = array<i64: 1, 2, 3>}]} {
    %c0 = arith.constant 0 : index
    %c0_0 = arith.constant 0 : index
    %c0_1 = arith.constant 0 : index
    %0 = vector.load %arg1[%c0, %c0_0, %c0_1] : memref<2x16x16xf32, #tpu.memory_space<vmem>>, vector<2x16x16xf32>
    %c0_2 = arith.constant 0 : index
    %c0_3 = arith.constant 0 : index
    %c0_4 = arith.constant 0 : index
    %1 = vector.load %arg2[%c0_2, %c0_3, %c0_4] : memref<2x16x16xf32, #tpu.memory_space<vmem>>, vector<2x16x16xf32>
    %cst = arith.constant 0.000000e+00 : f32
    %2 = vector.broadcast %cst : f32 to vector<2x1x16xf32>
    %3 = vector.extract_strided_slice %0 {offsets = [0, 0, 0], sizes = [2, 15, 16], strides = [1, 1, 1]} : vector<2x16x16xf32> to vector<2x15x16xf32>
    %4 = tpu.concatenate %2, %3 in 1 : vector<2x1x16xf32>, vector<2x15x16xf32> -> vector<2x16x16xf32>
    %cst_5 = arith.constant 2.000000e+00 : f32
    %5 = vector.broadcast %cst_5 : f32 to vector<2x16x16xf32>
    %6 = arith.mulf %5, %0 : vector<2x16x16xf32>
    %7 = arith.addf %4, %6 : vector<2x16x16xf32>
    %8 = vector.extract_strided_slice %0 {offsets = [0, 1, 0], sizes = [2, 15, 16], strides = [1, 1, 1]} : vector<2x16x16xf32> to vector<2x15x16xf32>
    %cst_6 = arith.constant 0.000000e+00 : f32
    %9 = vector.broadcast %cst_6 : f32 to vector<2x1x16xf32>
    %10 = tpu.concatenate %8, %9 in 1 : vector<2x15x16xf32>, vector<2x1x16xf32> -> vector<2x16x16xf32>
    %11 = arith.addf %7, %10 : vector<2x16x16xf32>
    %12 = vector.extract_strided_slice %11 {offsets = [0, 0, 1], sizes = [2, 16, 15], strides = [1, 1, 1]} : vector<2x16x16xf32> to vector<2x16x15xf32>
    %cst_7 = arith.constant 0.000000e+00 : f32
    %13 = vector.broadcast %cst_7 : f32 to vector<2x16x1xf32>
    %14 = tpu.concatenate %12, %13 in 2 : vector<2x16x15xf32>, vector<2x16x1xf32> -> vector<2x16x16xf32>
    %cst_8 = arith.constant 0.000000e+00 : f32
    %15 = vector.broadcast %cst_8 : f32 to vector<2x16x1xf32>
    %16 = vector.extract_strided_slice %11 {offsets = [0, 0, 0], sizes = [2, 16, 15], strides = [1, 1, 1]} : vector<2x16x16xf32> to vector<2x16x15xf32>
    %17 = tpu.concatenate %15, %16 in 2 : vector<2x16x1xf32>, vector<2x16x15xf32> -> vector<2x16x16xf32>
    %18 = arith.subf %14, %17 : vector<2x16x16xf32>
    %cst_9 = arith.constant 0.000000e+00 : f32
    %19 = vector.broadcast %cst_9 : f32 to vector<2x16x1xf32>
    %20 = vector.extract_strided_slice %0 {offsets = [0, 0, 0], sizes = [2, 16, 15], strides = [1, 1, 1]} : vector<2x16x16xf32> to vector<2x16x15xf32>
    %21 = tpu.concatenate %19, %20 in 2 : vector<2x16x1xf32>, vector<2x16x15xf32> -> vector<2x16x16xf32>
    %cst_10 = arith.constant 2.000000e+00 : f32
    %22 = vector.broadcast %cst_10 : f32 to vector<2x16x16xf32>
    %23 = arith.mulf %22, %0 : vector<2x16x16xf32>
    %24 = arith.addf %21, %23 : vector<2x16x16xf32>
    %25 = vector.extract_strided_slice %0 {offsets = [0, 0, 1], sizes = [2, 16, 15], strides = [1, 1, 1]} : vector<2x16x16xf32> to vector<2x16x15xf32>
    %cst_11 = arith.constant 0.000000e+00 : f32
    %26 = vector.broadcast %cst_11 : f32 to vector<2x16x1xf32>
    %27 = tpu.concatenate %25, %26 in 2 : vector<2x16x15xf32>, vector<2x16x1xf32> -> vector<2x16x16xf32>
    %28 = arith.addf %24, %27 : vector<2x16x16xf32>
    %cst_12 = arith.constant 0.000000e+00 : f32
    %29 = vector.broadcast %cst_12 : f32 to vector<2x1x16xf32>
    %30 = vector.extract_strided_slice %28 {offsets = [0, 0, 0], sizes = [2, 15, 16], strides = [1, 1, 1]} : vector<2x16x16xf32> to vector<2x15x16xf32>
    %31 = tpu.concatenate %29, %30 in 1 : vector<2x1x16xf32>, vector<2x15x16xf32> -> vector<2x16x16xf32>
    %32 = vector.extract_strided_slice %28 {offsets = [0, 1, 0], sizes = [2, 15, 16], strides = [1, 1, 1]} : vector<2x16x16xf32> to vector<2x15x16xf32>
    %cst_13 = arith.constant 0.000000e+00 : f32
    %33 = vector.broadcast %cst_13 : f32 to vector<2x1x16xf32>
    %34 = tpu.concatenate %32, %33 in 1 : vector<2x15x16xf32>, vector<2x1x16xf32> -> vector<2x16x16xf32>
    %35 = arith.subf %31, %34 : vector<2x16x16xf32>
    %36 = math.absf %18 : vector<2x16x16xf32>
    %37 = math.absf %35 : vector<2x16x16xf32>
    %38 = arith.addf %36, %37 : vector<2x16x16xf32>
    %cst_14 = arith.constant 0.000000e+00 : f32
    %39 = vector.broadcast %cst_14 : f32 to vector<2x1x16xf32>
    %40 = vector.extract_strided_slice %1 {offsets = [0, 0, 0], sizes = [2, 15, 16], strides = [1, 1, 1]} : vector<2x16x16xf32> to vector<2x15x16xf32>
    %41 = tpu.concatenate %39, %40 in 1 : vector<2x1x16xf32>, vector<2x15x16xf32> -> vector<2x16x16xf32>
    %cst_15 = arith.constant 2.000000e+00 : f32
    %42 = vector.broadcast %cst_15 : f32 to vector<2x16x16xf32>
    %43 = arith.mulf %42, %1 : vector<2x16x16xf32>
    %44 = arith.addf %41, %43 : vector<2x16x16xf32>
    %45 = vector.extract_strided_slice %1 {offsets = [0, 1, 0], sizes = [2, 15, 16], strides = [1, 1, 1]} : vector<2x16x16xf32> to vector<2x15x16xf32>
    %cst_16 = arith.constant 0.000000e+00 : f32
    %46 = vector.broadcast %cst_16 : f32 to vector<2x1x16xf32>
    %47 = tpu.concatenate %45, %46 in 1 : vector<2x15x16xf32>, vector<2x1x16xf32> -> vector<2x16x16xf32>
    %48 = arith.addf %44, %47 : vector<2x16x16xf32>
    %49 = vector.extract_strided_slice %48 {offsets = [0, 0, 1], sizes = [2, 16, 15], strides = [1, 1, 1]} : vector<2x16x16xf32> to vector<2x16x15xf32>
    %cst_17 = arith.constant 0.000000e+00 : f32
    %50 = vector.broadcast %cst_17 : f32 to vector<2x16x1xf32>
    %51 = tpu.concatenate %49, %50 in 2 : vector<2x16x15xf32>, vector<2x16x1xf32> -> vector<2x16x16xf32>
    %cst_18 = arith.constant 0.000000e+00 : f32
    %52 = vector.broadcast %cst_18 : f32 to vector<2x16x1xf32>
    %53 = vector.extract_strided_slice %48 {offsets = [0, 0, 0], sizes = [2, 16, 15], strides = [1, 1, 1]} : vector<2x16x16xf32> to vector<2x16x15xf32>
    %54 = tpu.concatenate %52, %53 in 2 : vector<2x16x1xf32>, vector<2x16x15xf32> -> vector<2x16x16xf32>
    %55 = arith.subf %51, %54 : vector<2x16x16xf32>
    %cst_19 = arith.constant 0.000000e+00 : f32
    %56 = vector.broadcast %cst_19 : f32 to vector<2x16x1xf32>
    %57 = vector.extract_strided_slice %1 {offsets = [0, 0, 0], sizes = [2, 16, 15], strides = [1, 1, 1]} : vector<2x16x16xf32> to vector<2x16x15xf32>
    %58 = tpu.concatenate %56, %57 in 2 : vector<2x16x1xf32>, vector<2x16x15xf32> -> vector<2x16x16xf32>
    %cst_20 = arith.constant 2.000000e+00 : f32
    %59 = vector.broadcast %cst_20 : f32 to vector<2x16x16xf32>
    %60 = arith.mulf %59, %1 : vector<2x16x16xf32>
    %61 = arith.addf %58, %60 : vector<2x16x16xf32>
    %62 = vector.extract_strided_slice %1 {offsets = [0, 0, 1], sizes = [2, 16, 15], strides = [1, 1, 1]} : vector<2x16x16xf32> to vector<2x16x15xf32>
    %cst_21 = arith.constant 0.000000e+00 : f32
    %63 = vector.broadcast %cst_21 : f32 to vector<2x16x1xf32>
    %64 = tpu.concatenate %62, %63 in 2 : vector<2x16x15xf32>, vector<2x16x1xf32> -> vector<2x16x16xf32>
    %65 = arith.addf %61, %64 : vector<2x16x16xf32>
    %cst_22 = arith.constant 0.000000e+00 : f32
    %66 = vector.broadcast %cst_22 : f32 to vector<2x1x16xf32>
    %67 = vector.extract_strided_slice %65 {offsets = [0, 0, 0], sizes = [2, 15, 16], strides = [1, 1, 1]} : vector<2x16x16xf32> to vector<2x15x16xf32>
    %68 = tpu.concatenate %66, %67 in 1 : vector<2x1x16xf32>, vector<2x15x16xf32> -> vector<2x16x16xf32>
    %69 = vector.extract_strided_slice %65 {offsets = [0, 1, 0], sizes = [2, 15, 16], strides = [1, 1, 1]} : vector<2x16x16xf32> to vector<2x15x16xf32>
    %cst_23 = arith.constant 0.000000e+00 : f32
    %70 = vector.broadcast %cst_23 : f32 to vector<2x1x16xf32>
    %71 = tpu.concatenate %69, %70 in 1 : vector<2x15x16xf32>, vector<2x1x16xf32> -> vector<2x16x16xf32>
    %72 = arith.subf %68, %71 : vector<2x16x16xf32>
    %73 = math.absf %55 : vector<2x16x16xf32>
    %74 = math.absf %72 : vector<2x16x16xf32>
    %75 = arith.addf %73, %74 : vector<2x16x16xf32>
    %cst_24 = arith.constant 0.000000e+00 : f32
    %76 = vector.broadcast %cst_24 : f32 to vector<2x16x16xf32>
    %c0_25 = arith.constant 0 : index
    %c0_26 = arith.constant 0 : index
    %c0_27 = arith.constant 0 : index
    %77 = vector.load %arg3[%c0_25, %c0_26, %c0_27] : memref<2x16x16xf32, #tpu.memory_space<vmem>>, vector<2x16x16xf32>
    %78 = arith.maximumf %76, %77 : vector<2x16x16xf32>
    %c0_28 = arith.constant 0 : index
    %c0_29 = arith.constant 0 : index
    %c0_30 = arith.constant 0 : index
    %79 = vector.load %arg4[%c0_28, %c0_29, %c0_30] : memref<2x16x16xf32, #tpu.memory_space<vmem>>, vector<2x16x16xf32>
    %80 = arith.maximumf %78, %79 : vector<2x16x16xf32>
    %c0_31 = arith.constant 0 : index
    %c0_32 = arith.constant 0 : index
    %c0_33 = arith.constant 0 : index
    %81 = vector.load %arg5[%c0_31, %c0_32, %c0_33] : memref<2x16x16xf32, #tpu.memory_space<vmem>>, vector<2x16x16xf32>
    %82 = arith.maximumf %80, %81 : vector<2x16x16xf32>
    %83 = arith.subf %0, %1 : vector<2x16x16xf32>
    %84 = math.absf %83 : vector<2x16x16xf32>
    %cst_34 = arith.constant dense<0.000000e+00> : vector<2x16xf32>
    %85 = vector.multi_reduction <add>, %84, %cst_34 [2] : vector<2x16x16xf32> to vector<2x16xf32>
    %cst_35 = arith.constant dense<0.000000e+00> : vector<2xf32>
    %86 = vector.multi_reduction <add>, %85, %cst_35 [1] : vector<2x16xf32> to vector<2xf32>
    %87 = vector.shape_cast %86 : vector<2xf32> to vector<2x1xf32>
    %88 = arith.subf %38, %75 : vector<2x16x16xf32>
    %89 = math.absf %88 : vector<2x16x16xf32>
    %cst_36 = arith.constant dense<0.000000e+00> : vector<2x16xf32>
    %90 = vector.multi_reduction <add>, %89, %cst_36 [2] : vector<2x16x16xf32> to vector<2x16xf32>
    %cst_37 = arith.constant dense<0.000000e+00> : vector<2xf32>
    %91 = vector.multi_reduction <add>, %90, %cst_37 [1] : vector<2x16xf32> to vector<2xf32>
    %92 = vector.shape_cast %91 : vector<2xf32> to vector<2x1xf32>
    %93 = arith.subf %38, %82 : vector<2x16x16xf32>
    %94 = math.absf %93 : vector<2x16x16xf32>
    %cst_38 = arith.constant dense<0.000000e+00> : vector<2x16xf32>
    %95 = vector.multi_reduction <add>, %94, %cst_38 [2] : vector<2x16x16xf32> to vector<2x16xf32>
    %cst_39 = arith.constant dense<0.000000e+00> : vector<2xf32>
    %96 = vector.multi_reduction <add>, %95, %cst_39 [1] : vector<2x16xf32> to vector<2xf32>
    %97 = vector.shape_cast %96 : vector<2xf32> to vector<2x1xf32>
    %98 = tpu.concatenate %87, %92, %97 in 1 : vector<2x1xf32>, vector<2x1xf32>, vector<2x1xf32> -> vector<2x3xf32>
    %c0_40 = arith.constant 0 : index
    %c0_41 = arith.constant 0 : index
    %c0_42 = arith.constant 0 : index
    %99 = vector.load %arg6[%c0_40, %c0_41, %c0_42] : memref<1x2x3xf32, #tpu.memory_space<vmem>>, vector<1x2x3xf32>
    %100 = vector.shape_cast %99 : vector<1x2x3xf32> to vector<2x3xf32>
    %101 = vector.shape_cast %98 : vector<2x3xf32> to vector<1x2x3xf32>
    tpu.vector_store %arg6[%c0_40, %c0_41, %c0_42], %101 {strides = array<i32>} : memref<1x2x3xf32, #tpu.memory_space<vmem>>, vector<1x2x3xf32>,
    return
  }
  func.func @transform_0(%arg0: i32) -> (i32, i32, i32) {
    %c0_i32 = arith.constant 0 : i32
    %c0_i32_0 = arith.constant 0 : i32
    %c0_i32_1 = arith.constant 0 : i32
    return %arg0, %c0_i32, %c0_i32_0 : i32, i32, i32
  }
  func.func @transform_1(%arg0: i32) -> (i32, i32, i32) {
    %c0_i32 = arith.constant 0 : i32
    %c0_i32_0 = arith.constant 0 : i32
    %c0_i32_1 = arith.constant 0 : i32
    return %arg0, %c0_i32, %c0_i32_0 : i32, i32, i32
  }
  func.func @transform_2(%arg0: i32) -> (i32, i32, i32) {
    %c0_i32 = arith.constant 0 : i32
    %c0_i32_0 = arith.constant 0 : i32
    %c0_i32_1 = arith.constant 0 : i32
    return %arg0, %c0_i32, %c0_i32_0 : i32, i32, i32
  }
  func.func @transform_3(%arg0: i32) -> (i32, i32, i32) {
    %c0_i32 = arith.constant 0 : i32
    %c0_i32_0 = arith.constant 0 : i32
    %c0_i32_1 = arith.constant 0 : i32
    return %arg0, %c0_i32, %c0_i32_0 : i32, i32, i32
  }
  func.func @transform_4(%arg0: i32) -> (i32, i32, i32) {
    %c0_i32 = arith.constant 0 : i32
    %c0_i32_0 = arith.constant 0 : i32
    %c0_i32_1 = arith.constant 0 : i32
    return %arg0, %c0_i32, %c0_i32_0 : i32, i32, i32
  }
  func.func @transform_5(%arg0: i32) -> (i32, i32, i32) {
    %c0_i32 = arith.constant 0 : i32
    %c0_i32_0 = arith.constant 0 : i32
    %c0_i32_1 = arith.constant 0 : i32
    return %arg0, %c0_i32, %c0_i32_0 : i32, i32, i32
  }
}

</mosaic_0001>

<bundles_post_ra>
// kernel: tpu_custom_call.1
= control target key start
LH: loop header
LB: loop body
LE: loop exit
PB: predicated region body
PF: predicated region fallthrough
CT: control target
= control target key end

     0   :  { %10 = vsyncpa [#allocation3], 0  ;;  %s1172_s0 = inlined_call_operand.hbm [shape: f32[2,16,16], index: 0, kind: input, shape index: {}]   ;;  %s1173_s1 = inlined_call_operand.hbm [shape: f32[2,16,16], index: 1, kind: input, shape index: {}]   ;;  %s1174_s2 = inlined_call_operand.hbm [shape: f32[2,16,16], index: 2, kind: input, shape index: {}]   ;;  %s1175_s3 = inlined_call_operand.hbm [shape: f32[2,16,16], index: 3, kind: input, shape index: {}]   ;;  %s1176_s4 = inlined_call_operand.hbm [shape: f32[2,16,16], index: 4, kind: input, shape index: {}]   ;;  %s1177_s5 = inlined_call_operand.hbm [shape: f32[1,2,3], index: 5, kind: output, shape index: {}]  }
   0x1   :  { %11 = vsyncpa [#allocation6], 0 }
   0x2   :  { %12 = vsyncpa [#allocation9], 0 }
   0x3   :  { %13 = vsyncpa [#allocation4], 0  ;;  %s773_s18 = smov [#allocation5]   ;;  %s774_s20 = smov [#allocation8]  }
   0x4   :  { %s31_s19 = sshll.u32 %s773_s18, 4  ;;  %s55_s21 = sshll.u32 %s774_s20, 4  ;;  %s32_s19 = int_to_ptr.vmem [resolvable:$true] %s31_s19  ;;  %s813_s21 = int_to_ptr.vmem [resolvable:$true] %s55_s21 }
   0x5   :  { %s633_s24 = scalar_lea.hbm %s1173_s1, 512 }
   0x6   :  { %p634_p0 = scmp.ne.s32.totalorder %s1173_s1, %s633_s24  ;;  %p637_p1 = scmp.lt.u32.totalorder %s633_s24, %s1173_s1 }
   0x8   :  { %p639_p2 = pnand %p637_p1, %p634_p0 }
   0xa   :  { %642 = shalt.err (!%p639_p2)
}
   0xb   :  { %s643_s29 = scalar_lea.vmem %s32_s19, 512  ;;  %p648_p4 = scmp.lt.s32.totalorder %s32_s19, %s32_s19 }
   0xc   :  { %p644_p3 = scmp.ne.s32.totalorder %s32_s19, %s643_s29  ;;  %p649_p5 = scmp.lt.s32.totalorder %s643_s29, %s643_s29 }
   0xe   :  { %p650_p6 = por %p649_p5, %p648_p4 }
  0x10   :  { %p651_p7 = pnand %p650_p6, %p644_p3 }
  0x12   :  { %654 = shalt.err (!%p651_p7)
}
  0x13   :  { %s775_s30 = smov 128   ;;  %s776_s6 = smov 8  }
  0x14   :  { %37 = dma.hbm_to_vmem [thread:$0]  %s1173_s1, 512, %s32_s19, [#allocation6], %s775_s30, %s775_s30, %s776_s6  }
  0x15   :  { %s655_s11 = scalar_lea.hbm %s1175_s3, 512 }
  0x16   :  { %p656_p8 = scmp.ne.s32.totalorder %s1175_s3, %s655_s11  ;;  %p659_p9 = scmp.lt.u32.totalorder %s655_s11, %s1175_s3 }
  0x18   :  { %p661_p10 = pnand %p659_p9, %p656_p8 }
  0x1a   :  { %664 = shalt.err (!%p661_p10)
}
  0x1b   :  { %s665_s16 = scalar_lea.vmem %s813_s21, 512  ;;  %p670_p12 = scmp.lt.s32.totalorder %s813_s21, %s813_s21 }
  0x1c   :  { %p666_p11 = scmp.ne.s32.totalorder %s813_s21, %s665_s16  ;;  %p671_p13 = scmp.lt.s32.totalorder %s665_s16, %s665_s16 }
  0x1e   :  { %p672_p0 = por %p671_p13, %p670_p12 }
  0x20   :  { %p673_p1 = pnand %p672_p0, %p666_p11 }
  0x22   :  { %676 = shalt.err (!%p673_p1)
}
  0x23   :  { %61 = dma.hbm_to_vmem [thread:$0]  %s1175_s3, 512, %s813_s21, [#allocation9], %s775_s30, %s775_s30, %s776_s6  }
  0x24   :  { %s777_s18 = smov [#allocation2]   ;;  %s778_s20 = smov [#allocation7]  }
  0x25   :  { %s19_s19 = sshll.u32 %s777_s18, 4  ;;  %s43_s22 = sshll.u32 %s778_s20, 4  ;;  %s20_s19 = int_to_ptr.vmem [resolvable:$true] %s19_s19  ;;  %s850_s22 = int_to_ptr.vmem [resolvable:$true] %s43_s22 }
  0x26   :  { %s677_s25 = scalar_lea.hbm %s1172_s0, 512 }
  0x27   :  { %p678_p2 = scmp.ne.s32.totalorder %s1172_s0, %s677_s25  ;;  %p681_p3 = scmp.lt.u32.totalorder %s677_s25, %s1172_s0 }
  0x29   :  { %p683_p4 = pnand %p681_p3, %p678_p2 }
  0x2b   :  { %686 = shalt.err (!%p683_p4)
}
  0x2c   :  { %s687_s3 = scalar_lea.vmem %s20_s19, 512  ;;  %p692_p6 = scmp.lt.s32.totalorder %s20_s19, %s20_s19 }
  0x2d   :  { %p688_p5 = scmp.ne.s32.totalorder %s20_s19, %s687_s3  ;;  %p693_p7 = scmp.lt.s32.totalorder %s687_s3, %s687_s3 }
  0x2f   :  { %p694_p8 = por %p693_p7, %p692_p6 }
  0x31   :  { %p695_p9 = pnand %p694_p8, %p688_p5 }
  0x33   :  { %698 = shalt.err (!%p695_p9)
}
  0x34   :  { %25 = dma.hbm_to_vmem [thread:$0]  %s1172_s0, 512, %s20_s19, [#allocation3], %s775_s30, %s775_s30, %s776_s6  }
  0x35   :  { %s699_s10 = scalar_lea.hbm %s1174_s2, 512 }
  0x36   :  { %p700_p10 = scmp.ne.s32.totalorder %s1174_s2, %s699_s10  ;;  %p703_p11 = scmp.lt.u32.totalorder %s699_s10, %s1174_s2 }
  0x38   :  { %p705_p12 = pnand %p703_p11, %p700_p10 }
  0x3a   :  { %708 = shalt.err (!%p705_p12)
}
  0x3b   :  { %s709_s15 = scalar_lea.vmem %s850_s22, 512  ;;  %p714_p0 = scmp.lt.s32.totalorder %s850_s22, %s850_s22 }
  0x3c   :  { %p710_p13 = scmp.ne.s32.totalorder %s850_s22, %s709_s15  ;;  %p715_p1 = scmp.lt.s32.totalorder %s709_s15, %s709_s15 }
  0x3e   :  { %p716_p2 = por %p715_p1, %p714_p0 }
  0x40   :  { %p717_p3 = pnand %p716_p2, %p710_p13 }
  0x42   :  { %720 = shalt.err (!%p717_p3)
}
  0x43   :  { %49 = dma.hbm_to_vmem [thread:$0]  %s1174_s2, 512, %s850_s22, [#allocation6], %s775_s30, %s775_s30, %s776_s6  }
  0x44   :  { %s779_s1 = smov [#allocation10]   ;;  %s721_s20 = scalar_lea.hbm %s1176_s4, 512 }
  0x45   :  { %s67_s17 = sshll.u32 %s779_s1, 4  ;;  %p722_p4 = scmp.ne.s32.totalorder %s1176_s4, %s721_s20  ;;  %s68_s17 = int_to_ptr.vmem [resolvable:$true] %s67_s17 }
  0x46   :  { %p725_p5 = scmp.lt.u32.totalorder %s721_s20, %s1176_s4 }
  0x48   :  { %p727_p6 = pnand %p725_p5, %p722_p4 }
  0x4a   :  { %730 = shalt.err (!%p727_p6)
}
  0x4b   :  { %s731_s27 = scalar_lea.vmem %s68_s17, 512  ;;  %p736_p8 = scmp.lt.s32.totalorder %s68_s17, %s68_s17 }
  0x4c   :  { %p732_p7 = scmp.ne.s32.totalorder %s68_s17, %s731_s27  ;;  %p737_p9 = scmp.lt.s32.totalorder %s731_s27, %s731_s27 }
  0x4e   :  { %p738_p10 = por %p737_p9, %p736_p8 }
  0x50   :  { %p739_p11 = pnand %p738_p10, %p732_p7 }
  0x52   :  { %742 = shalt.err (!%p739_p11)
}
  0x53   :  { %73 = dma.hbm_to_vmem [thread:$0]  %s1176_s4, 512, %s68_s17, [#allocation9], %s775_s30, %s775_s30, %s776_s6  }
  0x54   :  { %765 = dma.done.wait [#allocation3], 512  }
  0x55   :  { %766 = vsyncadd [#allocation3], 4294966784 }
  0x56   :  { %767 = dma.done.wait [#allocation6], 1024  }
  0x57   :  { %768 = vsyncadd [#allocation6], 4294966272 }
  0x58   :  { %769 = dma.done.wait [#allocation9], 1024  }
  0x59   :  { %770 = vsyncadd [#allocation9], 4294966272  ;;  %v902_v0 = vld [vmem:[#allocation2 + $0x10] sm:$0xff]  ;;  %v904_v1 = vld [vmem:[#allocation2] sm:$0xff]  ;;  %s780_s28 = smov 1   ;;  %s781_s4 = smov 127  }
  0x5a   :  { %185 = vrot.lane.b32.xlu1 %v902_v0, %s780_s28  ;;  %181 = vrot.lane.b32.xlu0 %v904_v1, %s780_s28  ;;  %v910_v2 = vld [vmem:[#allocation2 + $0x18] sm:$0xff]  ;;  %v912_v3 = vld [vmem:[#allocation2 + $0x8] sm:$0xff]  ;;  %v920_v5 = vld [vmem:[#allocation5] sm:$0xff]  ;;  %v102_v8 = vrot.slane %v904_v1, 7  ;;  %vm101_vm0 = vcmask 1040384   ;;  %v941_v10 = vmul.f32 2.0, %v904_v1 }
  0x5b   :  { %v918_v4 = vld [vmem:[#allocation5 + $0x8] sm:$0xff]  ;;  %v926_v6 = vld [vmem:[#allocation5 + $0x18] sm:$0xff]  ;;  %v928_v7 = vld [vmem:[#allocation5 + $0x10] sm:$0xff]  ;;  %v103_v9 = vrot.slane %v912_v3, 7  ;;  %v123_v12 = vrot.slane %v904_v1, 1  ;;  %v124_v13 = vrot.slane %v912_v3, 1  ;;  %v453_v37 = vsub.f32 %v904_v1, %v920_v5 }
  0x5c   :  { %v112_v11 = vsel %vm101_vm0, 0.0, %v102_v8  ;;  %v951_v14 = vmul.f32 2.0, %v912_v3  ;;  %vm122_vm1 = vcmask 1046528   ;;  %v105_v16 = vrot.slane %v902_v0, 7  ;;  %s782_s30 = smov [#allocation11]  }
  0x5d   :  { %v104_v15 = vsel %vm101_vm0, %v102_v8, %v103_v9  ;;  %v106_v17 = vrot.slane %v910_v2, 7  ;;  %v118_v18 = vadd.f32 %v941_v10, %v112_v11  ;;  %v958_v19 = vmul.f32 2.0, %v902_v0  ;;  %s612_s6 = sshll.u32 %s782_s30, 4  ;;  %s613_s6 = int_to_ptr.vmem [resolvable:$true] %s612_s6 }
  0x5e   :  { %187 = vrot.lane.b32.xlu1 %v910_v2, %s780_s28  ;;  %183 = vrot.lane.b32.xlu0 %v912_v3, %s780_s28  ;;  %v125_v20 = vsel %vm122_vm1, %v123_v12, %v124_v13  ;;  %v119_v21 = vadd.f32 %v951_v14, %v104_v15  ;;  %v126_v22 = vrot.slane %v902_v0, 1  ;;  %v968_v23 = vmul.f32 2.0, %v910_v2  ;;  %s743_s29 = scalar_lea.vmem %s613_s6, 32  ;;  %p748_p13 = scmp.lt.s32.totalorder %s613_s6, %s613_s6 }
  0x5f   :  { %v133_v24 = vsel %vm122_vm1, %v124_v13, 0.0  ;;  %v113_v25 = vsel %vm101_vm0, 0.0, %v105_v16  ;;  %v127_v26 = vrot.slane %v910_v2, 1  ;;  %v107_v27 = vsel %vm101_vm0, %v105_v16, %v106_v17  ;;  %p744_p12 = scmp.ne.s32.totalorder %s613_s6, %s743_s29  ;;  %p749_p0 = scmp.lt.s32.totalorder %s743_s29, %s743_s29 }
  0x60   :  { %v135_v28 = vadd.f32 %v125_v20, %v118_v18  ;;  %v136_v29 = vadd.f32 %v133_v24, %v119_v21  ;;  %v120_v30 = vadd.f32 %v958_v19, %v113_v25  ;;  %v121_v31 = vadd.f32 %v968_v23, %v107_v27 }
  0x61   :  { %v128_v32 = vsel %vm122_vm1, %v126_v22, %v127_v26  ;;  %v134_v33 = vsel %vm122_vm1, %v127_v26, 0.0  ;;  %v269_v36 = vrot.slane %v920_v5, 7  ;;  %v270_v38 = vrot.slane %v918_v4, 7  ;;  %p750_p1 = por %p749_p0, %p748_p13 }
  0x62   :  { %347 = vrot.lane.b32.xlu1 %v918_v4, %s780_s28  ;;  %345 = vrot.lane.b32.xlu0 %v920_v5, %s780_s28  ;;  %v137_v34 = vadd.f32 %v128_v32, %v120_v30  ;;  %v138_v35 = vadd.f32 %v134_v33, %v121_v31  ;;  %v989_v39 = vmul.f32 2.0, %v920_v5  ;;  %v289_v40 = vrot.slane %v920_v5, 1 }
  0x63   :  { %v290_v41 = vrot.slane %v918_v4, 1  ;;  %v279_v42 = vsel %vm101_vm0, 0.0, %v269_v36  ;;  %v997_v43 = vmul.f32 2.0, %v918_v4  ;;  %v455_v44 = vsub.f32 %v902_v0, %v928_v7  ;;  %p751_p2 = pnand %p750_p1, %p744_p12 }
  0x64   :  { %v271_v45 = vsel %vm101_vm0, %v269_v36, %v270_v38  ;;  %v272_v46 = vrot.slane %v928_v7, 7  ;;  %v273_v47 = vrot.slane %v926_v6, 7  ;;  %v285_v48 = vadd.f32 %v989_v39, %v279_v42  ;;  %v429_v38 = vld [vmem:[#allocation7] sm:$0xff] }
  0x65   :  { %v291_v49 = vsel %vm122_vm1, %v289_v40, %v290_v41  ;;  %v299_v50 = vsel %vm122_vm1, %v290_v41, 0.0  ;;  %v1008_v51 = vmul.f32 2.0, %v928_v7  ;;  %v286_v52 = vadd.f32 %v997_v43, %v271_v45 }
  0x66   :  { %351 = vrot.lane.b32.xlu1 %v926_v6, %s780_s28  ;;  %349 = vrot.lane.b32.xlu0 %v928_v7, %s780_s28  ;;  %v1014_v53 = vmul.f32 2.0, %v926_v6  ;;  %v456_v54 = vsub.f32 %v910_v2, %v926_v6  ;;  %v454_v55 = vsub.f32 %v912_v3, %v918_v4  ;;  %v280_v56 = vsel %vm101_vm0, 0.0, %v272_v46 }
  0x67   :  { %v292_v57 = vrot.slane %v928_v7, 1  ;;  %v293_v58 = vrot.slane %v926_v6, 1  ;;  %v274_v59 = vsel %vm101_vm0, %v272_v46, %v273_v47  ;;  %v301_v60 = vadd.f32 %v291_v49, %v285_v48 }
  0x68   :  { %v302_v61 = vadd.f32 %v299_v50, %v286_v52  ;;  %v287_v62 = vadd.f32 %v1008_v51, %v280_v56  ;;  %v288_v63 = vadd.f32 %v1014_v53, %v274_v59  ;;  %vm461_vm2 = vcmask 130048   ;;  %v438_v59 = vld [vmem:[#allocation8 + $0x8] sm:$0xff] }
  0x69   :  { %v460_v9 = vand.u32 2147483647, %v456_v54  ;;  %vm172_vm3 = vcmask 7168   ;;  %vm155_vm4 = vcmask 121856   ;;  %v433_v49 = vmax.f32 %v429_v38, 0.0 }
  0x6a   :  { %203 = vrot.lane.b32.xlu1 %v912_v3, %s781_s4  ;;  %201 = vrot.lane.b32.xlu0 %v904_v1, %s781_s4  ;;  %v300_v1 = vsel %vm122_vm1, %v293_v58, 0.0  ;;  %vm489_vm5 = vcmask 130112   ;;  %vm500_vm6 = vcmask 1041409   ;;  %vm503_vm7 = vcmask 123904  }
  0x6b   :  { %v304_v3 = vadd.f32 %v300_v1, %v288_v63  ;;  %v471_v12 = vsel %vm461_vm2, %v460_v9, 0.0  ;;  %vm602_vm8 = vcmask 15360   ;;  %vm604_vm9 = vcmask 17408  }
  0x6e   :  { %207 = vrot.lane.b32.xlu1 %v910_v2, %s781_s4  ;;  %205 = vrot.lane.b32.xlu0 %v902_v0, %s781_s4  ;;  %v294_v0 = vsel %vm122_vm1, %v292_v57, %v293_v58 }
  0x6f   :  { %v303_v2 = vadd.f32 %v294_v0, %v287_v62 }
  0x72   :  { %367 = vrot.lane.b32.xlu1 %v918_v4, %s781_s4  ;;  %365 = vrot.lane.b32.xlu0 %v920_v5, %s781_s4  ;;  %v457_v4 = vand.u32 2147483647, %v453_v37 }
  0x74   :  { %v462_v5 = vsel %vm461_vm2, %v457_v4, 0.0 }
  0x76   :  { %371 = vrot.lane.b32.xlu1 %v926_v6, %s781_s4  ;;  %369 = vrot.lane.b32.xlu0 %v928_v7, %s781_s4  ;;  %v459_v6 = vand.u32 2147483647, %v455_v44  ;;  %v458_v7 = vand.u32 2147483647, %v454_v55  ;;  %v430_v44 = vld [vmem:[#allocation7 + $0x8] sm:$0xff] }
  0x77   :  { %v434_v52 = vmax.f32 %v430_v44, 0.0 }
  0x78   :  { %v468_v8 = vsel %vm461_vm2, %v459_v6, 0.0  ;;  %v465_v11 = vsel %vm461_vm2, %v458_v7, 0.0 }
  0x79   :  { %v1071_v4 = vmax.f32 %v434_v52, %v438_v59 }
  0x7a   :  { %143 = vrot.lane.b32.xlu0 %v135_v28, %s781_s4  ;;  %145 = vrot.lane.b32.xlu1 %v136_v29, %s781_s4 }
  0x7e   :  { %147 = vrot.lane.b32.xlu0 %v137_v34, %s781_s4  ;;  %149 = vrot.lane.b32.xlu1 %v138_v35, %s781_s4 }
  0x82   :  { %160 = vrot.lane.b32.xlu0 %v135_v28, %s780_s28  ;;  %162 = vrot.lane.b32.xlu1 %v136_v29, %s780_s28 }
  0x86   :  { %164 = vrot.lane.b32.xlu0 %v137_v34, %s780_s28  ;;  %166 = vrot.lane.b32.xlu1 %v138_v35, %s780_s28 }
  0x8a   :  { %309 = vrot.lane.b32.xlu0 %v301_v60, %s781_s4  ;;  %311 = vrot.lane.b32.xlu1 %v302_v61, %s781_s4 }
  0x8e   :  { %313 = vrot.lane.b32.xlu0 %v303_v2, %s781_s4  ;;  %315 = vrot.lane.b32.xlu1 %v304_v3, %s781_s4 }
  0x92   :  { %325 = vrot.lane.b32.xlu0 %v301_v60, %s780_s28  ;;  %327 = vrot.lane.b32.xlu1 %v302_v61, %s780_s28 }
  0x96   :  { %329 = vrot.lane.b32.xlu0 %v303_v2, %s780_s28  ;;  %331 = vrot.lane.b32.xlu1 %v304_v3, %s780_s28  ;;  %v1069_v3 = vld [vmem:[#allocation10] sm:$0xff] }
  0xb5   :  { %463 = vadd.xlane.f32.xlu0 %v462_v5 }
  0xb9   :  { %469 = vadd.xlane.f32.xlu0 %v468_v8 }
  0xba   :  { %466 = vadd.xlane.f32.xlu1 %v465_v11 }
  0xbd   :  { %472 = vadd.xlane.f32.xlu0 %v471_v12  ;;  %v1076_v12 = vld [vmem:[#allocation10 + $0x8] sm:$0xff] }
  0xcc   :  { %v186_v13 = vpop.permute.xlu1 %185  ;;  %v182_v15 = vpop.permute.xlu0 %181 }
  0xcd   :  { %v193_v30 = vsel %vm172_vm3, 0.0, %v182_v15  ;;  %v195_v40 = vsel %vm172_vm3, 0.0, %v186_v13  ;;  %v431_v13 = vld [vmem:[#allocation7 + $0x10] sm:$0xff] }
  0xce   :  { %v197_v36 = vadd.f32 %v193_v30, %v941_v10  ;;  %v199_v50 = vadd.f32 %v195_v40, %v958_v19 }
  0xd0   :  { %v188_v16 = vpop.permute.xlu1 %187  ;;  %v184_v17 = vpop.permute.xlu0 %183 }
  0xd1   :  { %v194_v31 = vsel %vm172_vm3, 0.0, %v184_v17  ;;  %v196_v45 = vsel %vm172_vm3, 0.0, %v188_v16 }
  0xd2   :  { %v198_v37 = vadd.f32 %v194_v31, %v951_v14  ;;  %v437_v14 = vld [vmem:[#allocation8] sm:$0xff]  ;;  %v200_v54 = vadd.f32 %v196_v45, %v968_v23 }
  0xd3   :  { %v1065_v1 = vmax.f32 %v433_v49, %v437_v14 }
  0xd4   :  { %v348_v18 = vpop.permute.xlu1 %347  ;;  %v346_v20 = vpop.permute.xlu0 %345 }
  0xd5   :  { %v358_v55 = vsel %vm172_vm3, 0.0, %v348_v18  ;;  %v357_v56 = vsel %vm172_vm3, 0.0, %v346_v20 }
  0xd6   :  { %v362_v23 = vadd.f32 %v358_v55, %v997_v43  ;;  %v361_v5 = vadd.f32 %v357_v56, %v989_v39  ;;  %v449_v39 = vmax.f32 %v1065_v1, %v1069_v3 }
  0xd8   :  { %v352_v21 = vpop.permute.xlu1 %351  ;;  %v350_v22 = vpop.permute.xlu0 %349 }
  0xd9   :  { %v360_v6 = vsel %vm172_vm3, 0.0, %v352_v21  ;;  %v359_v7 = vsel %vm172_vm3, 0.0, %v350_v22 }
  0xda   :  { %v364_v21 = vadd.f32 %v360_v6, %v1014_v53 }
  0xdc   :  { %v204_v24 = vpop.permute.xlu1 %203  ;;  %v202_v25 = vpop.permute.xlu0 %201 }
  0xdd   :  { %v214_v34 = vsel %vm155_vm4, %v204_v24, 0.0  ;;  %v213_v35 = vsel %vm155_vm4, %v202_v25, 0.0  ;;  %v450_v25 = vmax.f32 %v1071_v4, %v1076_v12 }
  0xde   :  { %v218_v46 = vadd.f32 %v214_v34, %v198_v37  ;;  %v217_v47 = vadd.f32 %v213_v35, %v197_v36  ;;  %v439_v35 = vld [vmem:[#allocation8 + $0x10] sm:$0xff]  ;;  %v1089_v36 = vld [vmem:[#allocation7 + $0x18] sm:$0xff] }
  0xe0   :  { %v208_v26 = vpop.permute.xlu1 %207  ;;  %v206_v27 = vpop.permute.xlu0 %205  ;;  %v238_v60 = vrot.slane %v218_v46, 1  ;;  %v225_v61 = vrot.slane %v217_v47, 7  ;;  %v237_v62 = vrot.slane %v217_v47, 1  ;;  %v226_v8 = vrot.slane %v218_v46, 7 }
  0xe1   :  { %v215_v48 = vsel %vm155_vm4, %v206_v27, 0.0  ;;  %v216_v10 = vsel %vm155_vm4, %v208_v26, 0.0  ;;  %v435_v26 = vmax.f32 %v431_v13, 0.0  ;;  %v363_v27 = vadd.f32 %v359_v7, %v1008_v51 }
  0xe2   :  { %v219_v63 = vadd.f32 %v215_v48, %v199_v50  ;;  %v220_v19 = vadd.f32 %v216_v10, %v200_v54  ;;  %v235_v43 = vsel %vm101_vm0, 0.0, %v225_v61  ;;  %v239_v17 = vsel %vm122_vm1, %v237_v62, %v238_v60 }
  0xe3   :  { %v249_v30 = vsub.f32 %v235_v43, %v239_v17  ;;  %v227_v38 = vsel %vm101_vm0, %v225_v61, %v226_v8  ;;  %v436_v48 = vmax.f32 %v1089_v36, 0.0 }
  0xe4   :  { %v368_v28 = vpop.permute.xlu1 %367  ;;  %v366_v29 = vpop.permute.xlu0 %365  ;;  %v228_v15 = vrot.slane %v219_v63, 7  ;;  %v241_v18 = vrot.slane %v220_v19, 1  ;;  %v240_v20 = vrot.slane %v219_v63, 1  ;;  %v229_v37 = vrot.slane %v220_v19, 7 }
  0xe5   :  { %v378_v0 = vsel %vm155_vm4, %v368_v28, 0.0  ;;  %v377_v2 = vsel %vm155_vm4, %v366_v29, 0.0  ;;  %v247_v28 = vsel %vm122_vm1, %v238_v60, 0.0  ;;  %v257_v50 = vand.u32 2147483647, %v249_v30 }
  0xe6   :  { %v382_v16 = vadd.f32 %v378_v0, %v362_v23  ;;  %v381_v24 = vadd.f32 %v377_v2, %v361_v5  ;;  %v236_v53 = vsel %vm101_vm0, 0.0, %v228_v15  ;;  %v242_v51 = vsel %vm122_vm1, %v240_v20, %v241_v18 }
  0xe7   :  { %v1098_v49 = vsel %vm122_vm1, %v241_v18, 0.0  ;;  %v250_v14 = vsub.f32 %v227_v38, %v247_v28  ;;  %v251_v59 = vsub.f32 %v236_v53, %v242_v51  ;;  %v230_v60 = vsel %vm101_vm0, %v228_v15, %v229_v37 }
  0xe8   :  { %v372_v32 = vpop.permute.xlu1 %371  ;;  %v370_v33 = vpop.permute.xlu0 %369  ;;  %v389_v40 = vrot.slane %v381_v24, 7  ;;  %v401_v44 = vrot.slane %v381_v24, 1  ;;  %v390_v46 = vrot.slane %v382_v16, 7 }
  0xe9   :  { %v380_v22 = vsel %vm155_vm4, %v372_v32, 0.0  ;;  %v379_v29 = vsel %vm155_vm4, %v370_v33, 0.0  ;;  %v402_v32 = vrot.slane %v382_v16, 1  ;;  %v1094_v33 = vmax.f32 %v435_v26, %v439_v35 }
  0xea   :  { %v384_v45 = vadd.f32 %v380_v22, %v364_v21  ;;  %v383_v47 = vadd.f32 %v379_v29, %v363_v27  ;;  %v399_v61 = vsel %vm101_vm0, 0.0, %v389_v40  ;;  %v391_v5 = vsel %vm101_vm0, %v389_v40, %v390_v46 }
  0xeb   :  { %v411_v55 = vsel %vm122_vm1, %v402_v32, 0.0  ;;  %v403_v19 = vsel %vm122_vm1, %v401_v44, %v402_v32  ;;  %v258_v43 = vand.u32 2147483647, %v250_v14  ;;  %v259_v15 = vand.u32 2147483647, %v251_v59 }
  0xec   :  { %v1049_v41 = vpop.permute.xlu0 %143  ;;  %v1051_v42 = vpop.permute.xlu1 %145  ;;  %v405_v62 = vrot.slane %v384_v45, 1  ;;  %v392_v0 = vrot.slane %v383_v47, 7  ;;  %v393_v6 = vrot.slane %v384_v45, 7  ;;  %v404_v7 = vrot.slane %v383_v47, 1  ;;  %v440_v47 = vld [vmem:[#allocation8 + $0x18] sm:$0xff] }
  0xed   :  { %v156_v63 = vsel %vm155_vm4, %v1049_v41, 0.0  ;;  %v157_v23 = vsel %vm155_vm4, %v1051_v42, 0.0  ;;  %v252_v41 = vsub.f32 %v230_v60, %v1098_v49  ;;  %v413_v18 = vsub.f32 %v399_v61, %v403_v19 }
  0xee   :  { %v412_v17 = vsel %vm122_vm1, %v405_v62, 0.0  ;;  %v414_v20 = vsub.f32 %v391_v5, %v411_v55  ;;  %v400_v24 = vsel %vm101_vm0, 0.0, %v392_v0  ;;  %v444_v5 = vmax.f32 %v436_v48, %v440_v47 }
  0xef   :  { %v421_v32 = vand.u32 2147483647, %v413_v18 }
  0xf0   :  { %v1060_v57 = vpop.permute.xlu0 %147  ;;  %v1062_v58 = vpop.permute.xlu1 %149  ;;  %v422_v38 = vand.u32 2147483647, %v414_v20 }
  0xf1   :  { %v158_v42 = vsel %vm155_vm4, %v1060_v57, 0.0  ;;  %v159_v21 = vsel %vm155_vm4, %v1062_v58, 0.0 }
  0xf4   :  { %v161_v9 = vpop.permute.xlu0 %160  ;;  %v163_v11 = vpop.permute.xlu1 %162 }
  0xf5   :  { %v173_v10 = vsel %vm172_vm3, 0.0, %v161_v9  ;;  %v174_v56 = vsel %vm172_vm3, 0.0, %v163_v11 }
  0xf6   :  { %v177_v2 = vsub.f32 %v156_v63, %v173_v10  ;;  %v178_v8 = vsub.f32 %v157_v23, %v174_v56 }
  0xf8   :  { %v165_v31 = vpop.permute.xlu0 %164  ;;  %v167_v34 = vpop.permute.xlu1 %166  ;;  %v253_v22 = vand.u32 2147483647, %v177_v2  ;;  %v254_v27 = vand.u32 2147483647, %v178_v8 }
  0xf9   :  { %v175_v9 = vsel %vm172_vm3, 0.0, %v165_v31  ;;  %v176_v16 = vsel %vm172_vm3, 0.0, %v167_v34  ;;  %v406_v31 = vsel %vm122_vm1, %v404_v7, %v405_v62  ;;  %v394_v34 = vsel %vm101_vm0, %v392_v0, %v393_v6 }
  0xfa   :  { %v179_v26 = vsub.f32 %v158_v42, %v175_v9  ;;  %v180_v28 = vsub.f32 %v159_v21, %v176_v16  ;;  %v261_v44 = vadd.f32 %v257_v50, %v253_v22  ;;  %v415_v51 = vsub.f32 %v400_v24, %v406_v31 }
  0xfb   :  { %v416_v46 = vsub.f32 %v394_v34, %v412_v17  ;;  %v262_v49 = vadd.f32 %v258_v43, %v254_v27  ;;  %v260_v0 = vand.u32 2147483647, %v252_v41 }
  0xfc   :  { %v310_v52 = vpop.permute.xlu0 %309  ;;  %v312_v54 = vpop.permute.xlu1 %311  ;;  %v255_v45 = vand.u32 2147483647, %v179_v26  ;;  %v256_v10 = vand.u32 2147483647, %v180_v28  ;;  %v423_v23 = vand.u32 2147483647, %v415_v51  ;;  %v554_v41 = vsub.f32 %v261_v44, %v449_v39 }
  0xfd   :  { %v321_v35 = vsel %vm155_vm4, %v310_v52, 0.0  ;;  %v322_v57 = vsel %vm155_vm4, %v312_v54, 0.0  ;;  %v424_v2 = vand.u32 2147483647, %v416_v46  ;;  %v555_v36 = vsub.f32 %v262_v49, %v450_v25 }
  0xfe   :  { %v263_v43 = vadd.f32 %v259_v15, %v255_v45  ;;  %v264_v16 = vadd.f32 %v260_v0, %v256_v10 }
  0xff   :  { %v559_v1 = vand.u32 2147483647, %v555_v36 }
 0x100   :  { %v314_v11 = vpop.permute.xlu0 %313  ;;  %v316_v13 = vpop.permute.xlu1 %315 }
 0x101   :  { %v323_v54 = vsel %vm155_vm4, %v314_v11, 0.0  ;;  %v324_v59 = vsel %vm155_vm4, %v316_v13, 0.0  ;;  %v447_v11 = vld [vmem:[#allocation10 + $0x10] sm:$0xff]  ;;  %v448_v13 = vld [vmem:[#allocation10 + $0x18] sm:$0xff] }
 0x102   :  { %v451_v48 = vmax.f32 %v1094_v33, %v447_v11  ;;  %v452_v24 = vmax.f32 %v444_v5, %v448_v13  ;;  %v565_v33 = vsel %vm461_vm2, %v559_v1, 0.0 }
 0x104   :  { %v326_v29 = vpop.permute.xlu0 %325  ;;  %v328_v30 = vpop.permute.xlu1 %327  ;;  %v556_v12 = vsub.f32 %v263_v43, %v451_v48  ;;  %v557_v39 = vsub.f32 %v264_v16, %v452_v24 }
 0x105   :  { %v337_v37 = vsel %vm172_vm3, 0.0, %v326_v29  ;;  %v338_v53 = vsel %vm172_vm3, 0.0, %v328_v30  ;;  %v558_v29 = vand.u32 2147483647, %v554_v41 }
 0x106   :  { %v341_v58 = vsub.f32 %v321_v35, %v337_v37  ;;  %v342_v40 = vsub.f32 %v322_v57, %v338_v53  ;;  %v560_v30 = vand.u32 2147483647, %v556_v12  ;;  %v561_v31 = vand.u32 2147483647, %v557_v39 }
 0x107   :  { %v562_v25 = vsel %vm461_vm2, %v558_v29, 0.0  ;;  %v478_v57 = vlaneseq }
 0x108   :  { %v417_v14 = vand.u32 2147483647, %v341_v58  ;;  %v418_v55 = vand.u32 2147483647, %v342_v40  ;;  %v330_v52 = vpop.permute.xlu0 %329  ;;  %v332_v56 = vpop.permute.xlu1 %331  ;;  %v568_v34 = vsel %vm461_vm2, %v560_v30, 0.0  ;;  %v571_v35 = vsel %vm461_vm2, %v561_v31, 0.0 }
 0x109   :  { %v339_v60 = vsel %vm172_vm3, 0.0, %v330_v52  ;;  %v340_v61 = vsel %vm172_vm3, 0.0, %v332_v56  ;;  %v479_v37 = vand.u32 127, %v478_v57  ;;  %v481_v53 = vshrl.u32 %v478_v57, 7 }
 0x10a   :  { %v425_v62 = vadd.f32 %v421_v32, %v417_v14  ;;  %v426_v50 = vadd.f32 %v422_v38, %v418_v55  ;;  %v343_v63 = vsub.f32 %v323_v54, %v339_v60  ;;  %v344_v19 = vsub.f32 %v324_v59, %v340_v61 }
 0x10b   :  { %v484_v32 = vadd.s32 4294967288, %v479_v37  ;;  %v482_v38 = vsub.s32 %v479_v37, %v481_v53 }
 0x10c   :  { %v419_v6 = vand.u32 2147483647, %v343_v63  ;;  %v420_v7 = vand.u32 2147483647, %v344_v19  ;;  %v507_v8 = vsub.f32 %v261_v44, %v425_v62  ;;  %v508_v9 = vsub.f32 %v262_v49, %v426_v50 }
 0x10d   :  { %v487_v40 = vsub.s32 %v484_v32, %v481_v53 }
 0x10e   :  { %v427_v17 = vadd.f32 %v423_v23, %v419_v6  ;;  %v428_v42 = vadd.f32 %v424_v2, %v420_v7  ;;  %v511_v18 = vand.u32 2147483647, %v507_v8  ;;  %v512_v20 = vand.u32 2147483647, %v508_v9 }
 0x110   :  { %v515_v21 = vsel %vm461_vm2, %v511_v18, 0.0  ;;  %v518_v15 = vsel %vm461_vm2, %v512_v20, 0.0  ;;  %v509_v22 = vsub.f32 %v263_v43, %v427_v17  ;;  %v510_v26 = vsub.f32 %v264_v16, %v428_v42 }
 0x111   :  { %516 = vadd.xlane.f32.xlu1 %v515_v21  ;;  %519 = vadd.xlane.f32.xlu0 %v518_v15 }
 0x112   :  { %v513_v27 = vand.u32 2147483647, %v509_v22  ;;  %v514_v28 = vand.u32 2147483647, %v510_v26 }
 0x114   :  { %v521_v3 = vsel %vm461_vm2, %v513_v27, 0.0  ;;  %v524_v4 = vsel %vm461_vm2, %v514_v28, 0.0 }
 0x115   :  { %522 = vadd.xlane.f32.xlu1 %v521_v3  ;;  %525 = vadd.xlane.f32.xlu0 %v524_v4 }
 0x119   :  { %563 = vadd.xlane.f32.xlu1 %v562_v25  ;;  %566 = vadd.xlane.f32.xlu0 %v565_v33 }
 0x11d   :  { %569 = vadd.xlane.f32.xlu1 %v568_v34  ;;  %572 = vadd.xlane.f32.xlu0 %v571_v35 }
 0x142   :  { %v464_v58 = vpop.xlane.xlu0 %463 }
 0x143   :  { %v483_v45 = vrot.slane %v464_v58, %v482_v38 }
 0x146   :  { %v470_v44 = vpop.xlane.xlu0 %469 }
 0x147   :  { %v467_v51 = vpop.xlane.xlu1 %466  ;;  %v494_v47 = vrot.slane %v470_v44, %v482_v38 }
 0x148   :  { %v488_v46 = vrot.slane %v467_v51, %v487_v40 }
 0x14a   :  { %v473_v49 = vpop.xlane.xlu0 %472  ;;  %v490_v14 = vsel %vm489_vm5, %v488_v46, %v483_v45 }
 0x14b   :  { %v498_v10 = vrot.slane %v473_v49, %v487_v40 }
 0x14d   :  { %v499_v55 = vsel %vm489_vm5, %v498_v10, %v494_v47 }
 0x14e   :  { %v501_v52 = vsel %vm500_vm6, %v499_v55, %v490_v14 }
 0x14f   :  { %v504_v56 = vsel %vm503_vm7, %v501_v52, 0.0 }
 0x150   :  { %505 = vadd.xlane.f32.xlu1 %v504_v56 }
 0x19e   :  { %v520_v54 = vpop.xlane.xlu0 %519  ;;  %v517_v59 = vpop.xlane.xlu1 %516 }
 0x19f   :  { %v538_v60 = vrot.slane %v520_v54, %v487_v40  ;;  %v534_v61 = vrot.slane %v517_v59, %v482_v38 }
 0x1a1   :  { %v539_v0 = vsel %vm489_vm5, %v538_v60, %v534_v61 }
 0x1a2   :  { %v526_v62 = vpop.xlane.xlu0 %525  ;;  %v523_v50 = vpop.xlane.xlu1 %522 }
 0x1a3   :  { %v547_v63 = vrot.slane %v526_v62, %v487_v40  ;;  %v543_v19 = vrot.slane %v523_v50, %v482_v38 }
 0x1a5   :  { %v548_v23 = vsel %vm489_vm5, %v547_v63, %v543_v19 }
 0x1a6   :  { %v567_v2 = vpop.xlane.xlu0 %566  ;;  %v564_v5 = vpop.xlane.xlu1 %563  ;;  %v549_v6 = vsel %vm500_vm6, %v548_v23, %v539_v0 }
 0x1a7   :  { %v551_v7 = vsel %vm503_vm7, %v549_v6, 0.0  ;;  %v585_v8 = vrot.slane %v567_v2, %v487_v40  ;;  %v581_v9 = vrot.slane %v564_v5, %v482_v38 }
 0x1a8   :  { %552 = vadd.xlane.f32.xlu0 %v551_v7 }
 0x1a9   :  { %v586_v17 = vsel %vm489_vm5, %v585_v8, %v581_v9 }
 0x1aa   :  { %v573_v11 = vpop.xlane.xlu0 %572  ;;  %v570_v13 = vpop.xlane.xlu1 %569 }
 0x1ab   :  { %v594_v43 = vrot.slane %v573_v11, %v487_v40  ;;  %v590_v16 = vrot.slane %v570_v13, %v482_v38 }
 0x1ad   :  { %v595_v42 = vsel %vm489_vm5, %v594_v43, %v590_v16 }
 0x1ae   :  { %v596_v18 = vsel %vm500_vm6, %v595_v42, %v586_v17 }
 0x1af   :  { %v598_v20 = vsel %vm503_vm7, %v596_v18, 0.0 }
 0x1b0   :  { %599 = vadd.xlane.f32.xlu1 %v598_v20 }
 0x1dd   :  { %v506_v41 = vpop.xlane.xlu1 %505 }
 0x235   :  { %v553_v36 = vpop.xlane.xlu0 %552 }
 0x236   :  { %v601_v48 = vsel %vm172_vm3, %v506_v41, %v553_v36 }
 0x23d   :  { %v600_v24 = vpop.xlane.xlu1 %599 }
 0x23e   :  { %v603_v21 = vsel %vm602_vm8, %v601_v48, %v600_v24 }
 0x23f   :  { %605 = vst.msk [vmem:[#allocation11] sm:$0x3] %vm604_vm9, %v603_v21 }
 0x240   :  { %754 = shalt.err (!%p751_p2)
}
 0x241   :  { %s755_s7 = scalar_lea.hbm %s1177_s5, 32 }
 0x242   :  { %p756_p3 = scmp.ne.s32.totalorder %s1177_s5, %s755_s7  ;;  %p759_p4 = scmp.lt.u32.totalorder %s755_s7, %s1177_s5 }
 0x244   :  { %p761_p5 = pnand %p759_p4, %p756_p3 }
 0x246   :  { %764 = shalt.err (!%p761_p5)
}
 0x247   :  { %615 = dma.vmem_to_hbm [thread:$0]  %s613_s6, 32, %s1177_s5, [#allocation4]  }
 0x248   :  { %771 = dma.done.wait [#allocation4], 32  }
 0x249   :  { %772 = vsyncadd [#allocation4], 4294967264 }
 0x24a   :  { %619 = vsyncpa [#allocation3], 1 }
 0x24b   :  { %620 = vsyncpa [#allocation6], 1 }
 0x24c   :  { %621 = vsyncpa [#allocation9], 1 }
 0x24d   :  { %622 = vsyncpa [#allocation4], 1 }

</bundles_post_ra>
